<compile_context>
chip_gen: v7x
topology: tpu7x:2x2x1
jax: 0.10.0
libtpu: 0.0.40
codegen_flags: <defaults>
</compile_context>

<pallas_src>
import jax
import jax.numpy as jnp
from jax import lax
from jax.experimental import pallas as pl
from jax.experimental.pallas import tpu as pltpu

LANE = 128
_ALLOWED_TILE_ROWS = (512, 384, 256, 128, 64, 32, 16)   # divisors/multiples of 128


def _round_up(x, m):
    return ((x + m - 1) // m) * m


def _vmem_capacity_bytes():
    try:
        return int(pltpu.get_tpu_info().vmem_capacity_bytes)
    except Exception:
        return 64 << 20      # conservative fallback (v7x per-core VMEM)


def _plan_tiling(n, tile_rows=None):
    """Generation-aware A row-tile size and padded node count."""
    cap = _vmem_capacity_bytes()
    big_vmem = cap >= (100 << 20)                 # v5e / v6e: 128 MiB physical
    a_budget = (24 << 20) if big_vmem else (12 << 20)   # double-buffered bf16 A tile
    max_rows = 512 if big_vmem else 256                 # v7x keeps smaller tiles
    n_pad0 = _round_up(max(n, 1), LANE)
    if tile_rows is None:
        cap_rows = min(a_budget // (2 * 2 * n_pad0), max_rows, n_pad0)
    else:
        cap_rows = max(16, int(tile_rows))
    rows = 16
    for t in _ALLOWED_TILE_ROWS:
        if t <= cap_rows:
            rows = t
            break
    # n_pad multiple of lcm(tile_rows, 128) -> lane-dense A tiles, whole grid.
    n_pad = _round_up(max(n, 1), max(rows, LANE))
    return rows, n_pad, cap


def _mosaic_params(needed_bytes, cap, semantics):
    limit = int(min(cap - (4 << 20), max(needed_bytes + (8 << 20), 32 << 20)))
    return pltpu.CompilerParams(dimension_semantics=semantics,
                                vmem_limit_bytes=limit)


def _resident_spec(shape, index_map):
    # Constant-index blocks: single-buffer them (halves their VMEM) when the
    # installed JAX supports pipeline_mode; fall back to the default otherwise.
    try:
        return pl.BlockSpec(shape, index_map, pipeline_mode=pl.Buffered(1))
    except Exception:
        return pl.BlockSpec(shape, index_map)


def _pad2(a, rows, cols, dtype):
    out = jnp.zeros((rows, cols), dtype)
    return out.at[: a.shape[0], : a.shape[1]].set(a.astype(dtype))


def _pad_row(b, cols):
    out = jnp.zeros((1, cols), jnp.float32)
    return out.at[0, : b.shape[0]].set(b.astype(jnp.float32))


def _build_a_hat(edge_index, n, n_pad):
    """Symmetrically-normalized adjacency with self loops, built at padded size
    in bf16 with one scatter-add (duplicate edges sum, as in PyG GCNConv)."""
    src = edge_index[0].astype(jnp.int32)
    dst = edge_index[1].astype(jnp.int32)
    deg = jnp.ones((n,), jnp.float32).at[dst].add(1.0)    # in-degree + self loop
    dinv = lax.rsqrt(deg)                                  # deg >= 1 always
    loop = jnp.arange(n, dtype=jnp.int32)
    rows = jnp.concatenate([dst, loop])
    cols = jnp.concatenate([src, loop])
    vals = jnp.concatenate([dinv[dst] * dinv[src], dinv * dinv])
    a = jnp.zeros((n_pad, n_pad), jnp.bfloat16)
    # NOTE: bf16 A loses ~3 significant digits; fine for classification.
    return a.at[rows, cols].add(vals.astype(jnp.bfloat16))


def _build_pool_t(batch, n, n_pad, num_graphs, g_pad):
    onehot = (batch[None, :] == jnp.arange(num_graphs)[:, None]).astype(jnp.float32)
    counts = jnp.maximum(jnp.sum(onehot, axis=1, keepdims=True), 1.0)
    pool = onehot / counts                                 # [G, N]
    pt = jnp.zeros((n_pad, g_pad), jnp.float32)            # padded rows/cols zero
    return pt.at[:n, :num_graphs].set(pool.T)


# ---------------------------------------------------------------------------
# Kernels
# ---------------------------------------------------------------------------
def gcn_layer_kernel(a_ref, xw_ref, b_ref, out_ref):
    """One GCN layer on one row tile of A: out = relu(A_tile @ (XW) + b)."""
    h = jnp.dot(a_ref[...], xw_ref[...], preferred_element_type=jnp.float32)
    out_ref[...] = jnp.maximum(h + b_ref[...], 0.0).astype(out_ref.dtype)


def gcn_final_partial_kernel(a_ref, xw_ref, b_ref, pt_ref, part_ref):
    """Layer 3 on one row tile + this tile's mean-pool partial: P_tile^T @ h3."""
    h = jnp.dot(a_ref[...], xw_ref[...], preferred_element_type=jnp.float32)
    h = jnp.maximum(h + b_ref[...], 0.0)                             # [tm, H3] f32
    part = lax.dot_general(pt_ref[...], h,
                           dimension_numbers=(((0,), (0,)), ((), ())),
                           preferred_element_type=jnp.float32)       # [G, H3]
    part_ref[...] = part[None]


def classifier_kernel(part_ref, wc1_ref, bc1_ref, wc2_ref, bc2_ref, mask_ref,
                      out_ref):
    """Reduce per-tile pooled partials + MLP classifier + log_softmax."""
    pooled = jnp.sum(part_ref[...], axis=0)                          # [G, H3] f32
    z = jnp.dot(pooled.astype(jnp.bfloat16), wc1_ref[...],
                preferred_element_type=jnp.float32) + bc1_ref[...]
    z = jnp.maximum(z, 0.0)
    logits = jnp.dot(z.astype(jnp.bfloat16), wc2_ref[...],
                     preferred_element_type=jnp.float32) + bc2_ref[...]
    logits = logits + mask_ref[...]                                  # mask pad classes
    m = jnp.max(logits, axis=-1, keepdims=True)
    lse = jnp.log(jnp.sum(jnp.exp(logits - m), axis=-1, keepdims=True)) + m
    out_ref[...] = logits - lse


def gcn_fused_kernel(a_ref, x_ref, w1_ref, b1_ref, w2_ref, b2_ref, w3_ref, b3_ref,
                     pt_ref, wc1_ref, bc1_ref, wc2_ref, bc2_ref, mask_ref, out_ref):
    """Resident-A fast path: 3 GCN layers + mean pool + classifier + log_softmax."""
    a = a_ref[...]                                                   # [N, N] bf16

    def layer(h_bf16, w_ref, b_ref):
        xw = jnp.dot(h_bf16, w_ref[...], preferred_element_type=jnp.float32)
        hh = jnp.dot(a, xw.astype(jnp.bfloat16), preferred_element_type=jnp.float32)
        return jnp.maximum(hh + b_ref[...], 0.0)

    h1 = layer(x_ref[...], w1_ref, b1_ref).astype(jnp.bfloat16)
    h2 = layer(h1, w2_ref, b2_ref).astype(jnp.bfloat16)
    h3 = layer(h2, w3_ref, b3_ref)                                   # [N, H3] f32
    pooled = lax.dot_general(pt_ref[...], h3,
                             dimension_numbers=(((0,), (0,)), ((), ())),
                             preferred_element_type=jnp.float32)     # [G, H3]
    z = jnp.maximum(jnp.dot(pooled.astype(jnp.bfloat16), wc1_ref[...],
                            preferred_element_type=jnp.float32) + bc1_ref[...], 0.0)
    logits = jnp.dot(z.astype(jnp.bfloat16), wc2_ref[...],
                     preferred_element_type=jnp.float32) + bc2_ref[...] + mask_ref[...]
    m = jnp.max(logits, axis=-1, keepdims=True)
    lse = jnp.log(jnp.sum(jnp.exp(logits - m), axis=-1, keepdims=True)) + m
    out_ref[...] = logits - lse


# ---------------------------------------------------------------------------
# pallas_call wrappers
# ---------------------------------------------------------------------------
def _gcn_layer_call(a_p, xw_p, b_p, tile_rows, cap):
    n_pad = a_p.shape[0]
    fout = xw_p.shape[1]
    n_tiles = n_pad // tile_rows
    row = lambda i: (i, 0)
    full = lambda i: (0, 0)
    needed = (2 * tile_rows * n_pad * 2        # double-buffered bf16 A tile
              + 2 * n_pad * fout * 2           # resident XW (conservative x2)
              + 2 * tile_rows * fout * 2       # bf16 out tile
              + fout * 4)
    cost = pl.CostEstimate(
        flops=int(2 * n_pad * n_pad * fout), transcendentals=0,
        bytes_accessed=int(a_p.size * 2 + xw_p.size * 2 + n_pad * fout * 2))
    return pl.pallas_call(
        gcn_layer_kernel,
        out_shape=jax.ShapeDtypeStruct((n_pad, fout), jnp.bfloat16),
        grid_spec=pltpu.PrefetchScalarGridSpec(
            num_scalar_prefetch=0,
            grid=(n_tiles,),
            in_specs=[pl.BlockSpec((tile_rows, n_pad), row),   # A row tile (bf16)
                      _resident_spec((n_pad, fout), full),     # X @ W (bf16)
                      _resident_spec((1, fout), full)],        # bias (f32)
            out_specs=pl.BlockSpec((tile_rows, fout), row)),
        compiler_params=_mosaic_params(needed, cap, ("parallel",)),
        cost_estimate=cost,
    )(a_p, xw_p, b_p)


def _gcn_final_partial_call(a_p, xw3_p, b3_p, pt_p, tile_rows, cap):
    n_pad = a_p.shape[0]
    h3_p = xw3_p.shape[1]
    g_pad = pt_p.shape[1]
    n_tiles = n_pad // tile_rows
    row = lambda i: (i, 0)
    full = lambda i: (0, 0)
    needed = (2 * tile_rows * n_pad * 2
              + 2 * n_pad * h3_p * 2
              + 2 * tile_rows * g_pad * 4
              + 2 * g_pad * h3_p * 4)
    cost = pl.CostEstimate(
        flops=int(2 * n_pad * n_pad * h3_p + 2 * n_pad * g_pad * h3_p),
        transcendentals=0,
        bytes_accessed=int(a_p.size * 2 + xw3_p.size * 2 + pt_p.size * 4
                           + n_tiles * g_pad * h3_p * 4))
    return pl.pallas_call(
        gcn_final_partial_kernel,
        out_shape=jax.ShapeDtypeStruct((n_tiles, g_pad, h3_p), jnp.float32),
        grid_spec=pltpu.PrefetchScalarGridSpec(
            num_scalar_prefetch=0,
            grid=(n_tiles,),
            in_specs=[pl.BlockSpec((tile_rows, n_pad), row),   # A row tile (bf16)
                      _resident_spec((n_pad, h3_p), full),     # h2 @ W3 (bf16)
                      _resident_spec((1, h3_p), full),         # b3 (f32)
                      pl.BlockSpec((tile_rows, g_pad), row)],  # pool^T row tile
            out_specs=pl.BlockSpec((1, g_pad, h3_p), lambda i: (i, 0, 0))),
        compiler_params=_mosaic_params(needed, cap, ("parallel",)),
        cost_estimate=cost,
    )(a_p, xw3_p, b3_p, pt_p)


def _classifier_call(partials, wc1_p, bc1_p, wc2_p, bc2_p, cls_mask, cap):
    g_pad = partials.shape[1]
    c_p = wc2_p.shape[1]
    needed = int(partials.size * 4 + wc1_p.size * 2 + wc2_p.size * 2
                 + g_pad * c_p * 4 + (1 << 20))
    return pl.pallas_call(
        classifier_kernel,
        out_shape=jax.ShapeDtypeStruct((g_pad, c_p), jnp.float32),
        compiler_params=_mosaic_params(needed, cap, None),
    )(partials, wc1_p, bc1_p, wc2_p, bc2_p, cls_mask)


def _gcn_fused_call(a_p, x_p, weights, pt_p, cls_mask, cap):
    (w1_p, b1_p, w2_p, b2_p, w3_p, b3_p, wc1_p, bc1_p, wc2_p, bc2_p) = weights
    n_pad = a_p.shape[0]
    g_pad = pt_p.shape[1]
    c_p = wc2_p.shape[1]
    h_max = max(x_p.shape[1], w1_p.shape[1], w2_p.shape[1], w3_p.shape[1])
    needed = int(a_p.size * 2 + x_p.size * 2 + pt_p.size * 4
                 + 4 * n_pad * h_max * 4
                 + sum(w.size * 2 for w in (w1_p, w2_p, w3_p, wc1_p, wc2_p))
                 + (2 << 20))
    cost = pl.CostEstimate(
        flops=int(2 * n_pad * n_pad *
                  (w1_p.shape[1] + w2_p.shape[1] + w3_p.shape[1])),
        transcendentals=int(2 * g_pad * c_p),
        bytes_accessed=int(a_p.size * 2 + x_p.size * 2 + g_pad * c_p * 4))
    return pl.pallas_call(
        gcn_fused_kernel,
        out_shape=jax.ShapeDtypeStruct((g_pad, c_p), jnp.float32),
        compiler_params=_mosaic_params(needed, cap, None),
        cost_estimate=cost,
    )(a_p, x_p, w1_p, b1_p, w2_p, b2_p, w3_p, b3_p,
      pt_p, wc1_p, bc1_p, wc2_p, bc2_p, cls_mask)


# ---------------------------------------------------------------------------
# Forward
# ---------------------------------------------------------------------------
def activity_recognition_gcn_forward(x, edge_index, batch, params, num_graphs,
                                     tile_rows=None, use_fused=None):
    # TODO(synk): Dropout layers are treated as identity (eval-mode semantics).
    n, f = x.shape
    (w1, b1, w2, b2, w3, b3, wc1, bc1, wc2, bc2) = params
    c = wc2.shape[1]

    tile_rows, n_pad, cap = _plan_tiling(n, tile_rows)
    g_pad = _round_up(num_graphs, 8)
    f_p = _round_up(f, LANE)
    h1_p = _round_up(w1.shape[1], LANE)
    h2_p = _round_up(w2.shape[1], LANE)
    h3_p = _round_up(w3.shape[1], LANE)
    c1_p = _round_up(wc1.shape[1], LANE)
    c_p = _round_up(c, LANE)

    a_p = _build_a_hat(edge_index, n, n_pad)                 # bf16, one scatter
    x_p = _pad2(x, n_pad, f_p, jnp.bfloat16)                 # bf16 features
    pt_p = _build_pool_t(batch, n, n_pad, num_graphs, g_pad)

    w1_p = _pad2(w1, f_p, h1_p, jnp.bfloat16)
    w2_p = _pad2(w2, h1_p, h2_p, jnp.bfloat16)
    w3_p = _pad2(w3, h2_p, h3_p, jnp.bfloat16)
    wc1_p = _pad2(wc1, h3_p, c1_p, jnp.bfloat16)
    wc2_p = _pad2(wc2, c1_p, c_p, jnp.bfloat16)
    b1_p = _pad_row(b1, h1_p)
    b2_p = _pad_row(b2, h2_p)
    b3_p = _pad_row(b3, h3_p)
    bc1_p = _pad_row(bc1, c1_p)
    bc2_p = _pad_row(bc2, c_p)
    cls_mask = jnp.where(jnp.arange(c_p) < c, 0.0, -1e30)
    cls_mask = cls_mask.astype(jnp.float32).reshape(1, c_p)

    if use_fused is None:
        fused_bytes = (n_pad * n_pad * 2
                       + 6 * n_pad * max(f_p, h1_p, h2_p, h3_p) * 4 + (2 << 20))
        use_fused = fused_bytes <= cap // 2

    if use_fused:
        # A stays resident in VMEM; whole forward in one kernel, A read once.
        out = _gcn_fused_call(
            a_p, x_p,
            (w1_p, b1_p, w2_p, b2_p, w3_p, b3_p, wc1_p, bc1_p, wc2_p, bc2_p),
            pt_p, cls_mask, cap)
    else:
        # Streaming path: X @ W per layer is an O(N*F^2) GEMM, done once
        # outside the tile loop; the row-tiled kernel streams only A.
        xw1 = jnp.dot(x_p, w1_p, preferred_element_type=jnp.float32).astype(jnp.bfloat16)
        h1 = _gcn_layer_call(a_p, xw1, b1_p, tile_rows, cap)
        xw2 = jnp.dot(h1, w2_p, preferred_element_type=jnp.float32).astype(jnp.bfloat16)
        h2 = _gcn_layer_call(a_p, xw2, b2_p, tile_rows, cap)
        xw3 = jnp.dot(h2, w3_p, preferred_element_type=jnp.float32).astype(jnp.bfloat16)
        partials = _gcn_final_partial_call(a_p, xw3, b3_p, pt_p, tile_rows, cap)
        out = _classifier_call(partials, wc1_p, bc1_p, wc2_p, bc2_p, cls_mask, cap)
    return out[:num_graphs, :c]


def init_params(key, num_features, num_classes, hidden_dim):
    ks = jax.random.split(key, 5)

    def lin(k, fan_in, fan_out):
        scale = 1.0 / jnp.sqrt(jnp.float32(fan_in))
        w = jax.random.uniform(k, (fan_in, fan_out), jnp.float32, -scale, scale)
        b = jnp.zeros((fan_out,), jnp.float32)
        return w, b

    w1, b1 = lin(ks[0], num_features, hidden_dim)            # conv1
    w2, b2 = lin(ks[1], hidden_dim, hidden_dim)               # conv2
    w3, b3 = lin(ks[2], hidden_dim, hidden_dim // 2)          # conv3
    wc1, bc1 = lin(ks[3], hidden_dim // 2, hidden_dim // 4)   # classifier[0]
    wc2, bc2 = lin(ks[4], hidden_dim // 4, num_classes)       # classifier[3]
    return (w1, b1, w2, b2, w3, b3, wc1, bc1, wc2, bc2)


if __name__ == "__main__":
    key = jax.random.PRNGKey(0)
    k_x, k_p = jax.random.split(key)

    num_features = 4
    num_classes = 6
    hidden_dim = 32
    num_graphs = 2
    nodes_per_graph = 16
    n = num_graphs * nodes_per_graph

    x = jax.random.normal(k_x, (n, num_features), jnp.float32)
    batch = jnp.repeat(jnp.arange(num_graphs), nodes_per_graph)

    # edge_index [2, E]: bidirectional ring within each graph
    src_list, dst_list = [], []
    for g in range(num_graphs):
        base = g * nodes_per_graph
        for i in range(nodes_per_graph):
            a_node = base + i
            b_node = base + (i + 1) % nodes_per_graph
            src_list += [a_node, b_node]
            dst_list += [b_node, a_node]
    edge_index = jnp.array([src_list, dst_list], dtype=jnp.int32)

    params = init_params(k_p, num_features, num_classes, hidden_dim)

    fwd = jax.jit(activity_recognition_gcn_forward,
                  static_argnames=("num_graphs", "tile_rows", "use_fused"))

    # Fast path: A resident in VMEM, one fused pallas_call.
    out_fused = jax.block_until_ready(
        fwd(x, edge_index, batch, params, num_graphs=num_graphs, use_fused=True))

    # Streaming path: row-tiled A (2 tiles), parallel grid, partial-pool epilogue.
    out_tiled = jax.block_until_ready(
        fwd(x, edge_index, batch, params, num_graphs=num_graphs,
            tile_rows=64, use_fused=False))

    assert out_fused.shape == (num_graphs, num_classes)
    assert out_tiled.shape == (num_graphs, num_classes)
    for out in (out_fused, out_tiled):
        row_sums = jnp.exp(out).sum(axis=-1)         # log_softmax rows sum to 1
        assert bool(jnp.all(jnp.abs(row_sums - 1.0) < 1e-3))
    assert bool(jnp.all(jnp.abs(out_fused - out_tiled) < 5e-2))

    print("KERNEL_OK")
</pallas_src>

<mosaic_0001>
module attributes {stable_mosaic.version = 11 : i64} {
  func.func private @main(%arg0: i32) attributes {dimension_semantics = [#tpu.dimension_semantics<core_parallel>], iteration_bounds = array<i64: 2>, tpu.core_type = #tpu.core_type<sc_scalar_subcore>, window_params = []} {
    return
  }
}

module attributes {stable_mosaic.version = 11 : i64} {
  func.func private @main(%arg0: i32) attributes {dimension_semantics = [#tpu.dimension_semantics<core_parallel>], iteration_bounds = array<i64: 2>, tpu.core_type = #tpu.core_type<sc_scalar_subcore>, window_params = []} {
    return
  }
}

module attributes {stable_mosaic.version = 11 : i64} {
  func.func @gcn_fused_kernel(%arg0: memref<128x128xbf16, #tpu.memory_space<vmem>>, %arg1: memref<128x128xbf16, #tpu.memory_space<vmem>>, %arg2: memref<128x128xbf16, #tpu.memory_space<vmem>>, %arg3: memref<1x128xf32, #tpu.memory_space<vmem>>, %arg4: memref<128x128xbf16, #tpu.memory_space<vmem>>, %arg5: memref<1x128xf32, #tpu.memory_space<vmem>>, %arg6: memref<128x128xbf16, #tpu.memory_space<vmem>>, %arg7: memref<1x128xf32, #tpu.memory_space<vmem>>, %arg8: memref<128x8xf32, #tpu.memory_space<vmem>>, %arg9: memref<128x128xbf16, #tpu.memory_space<vmem>>, %arg10: memref<1x128xf32, #tpu.memory_space<vmem>>, %arg11: memref<128x128xbf16, #tpu.memory_space<vmem>>, %arg12: memref<1x128xf32, #tpu.memory_space<vmem>>, %arg13: memref<1x128xf32, #tpu.memory_space<vmem>>, %arg14: memref<8x128xf32, #tpu.memory_space<vmem>>) attributes {dimension_semantics = [], scalar_prefetch = 0 : i64, scratch_operands = 0 : i64, tpu.core_type = #tpu.core_type<tc>} {
    %c0 = arith.constant 0 : index
    %c0_0 = arith.constant 0 : index
    %0 = vector.load %arg0[%c0, %c0_0] : memref<128x128xbf16, #tpu.memory_space<vmem>>, vector<128x128xbf16>
    %c0_1 = arith.constant 0 : index
    %c0_2 = arith.constant 0 : index
    %1 = vector.load %arg1[%c0_1, %c0_2] : memref<128x128xbf16, #tpu.memory_space<vmem>>, vector<128x128xbf16>
    %c0_3 = arith.constant 0 : index
    %c0_4 = arith.constant 0 : index
    %2 = vector.load %arg2[%c0_3, %c0_4] : memref<128x128xbf16, #tpu.memory_space<vmem>>, vector<128x128xbf16>
    %cst = arith.constant dense<0.000000e+00> : vector<128x128xf32>
    %3 = tpu.matmul %1, %2, %cst {dimension_numbers = #tpu.dot_dimension_numbers<[1], [0], [0], [1], [0, 0, 1, 1], [], []>} : vector<128x128xbf16>, vector<128x128xbf16>, vector<128x128xf32> -> vector<128x128xf32>
    %4 = arith.truncf %3 : vector<128x128xf32> to vector<128x128xbf16>
    %cst_5 = arith.constant dense<0.000000e+00> : vector<128x128xf32>
    %5 = tpu.matmul %0, %4, %cst_5 {dimension_numbers = #tpu.dot_dimension_numbers<[1], [0], [0], [1], [0, 0, 1, 1], [], []>} : vector<128x128xbf16>, vector<128x128xbf16>, vector<128x128xf32> -> vector<128x128xf32>
    %c0_6 = arith.constant 0 : index
    %c0_7 = arith.constant 0 : index
    %6 = vector.load %arg3[%c0_6, %c0_7] : memref<1x128xf32, #tpu.memory_space<vmem>>, vector<1x128xf32>
    %7 = vector.broadcast %6 : vector<1x128xf32> to vector<128x128xf32>
    %8 = arith.addf %5, %7 : vector<128x128xf32>
    %cst_8 = arith.constant 0.000000e+00 : f32
    %9 = vector.broadcast %cst_8 : f32 to vector<128x128xf32>
    %10 = arith.maximumf %8, %9 : vector<128x128xf32>
    %11 = arith.truncf %10 : vector<128x128xf32> to vector<128x128xbf16>
    %c0_9 = arith.constant 0 : index
    %c0_10 = arith.constant 0 : index
    %12 = vector.load %arg4[%c0_9, %c0_10] : memref<128x128xbf16, #tpu.memory_space<vmem>>, vector<128x128xbf16>
    %cst_11 = arith.constant dense<0.000000e+00> : vector<128x128xf32>
    %13 = tpu.matmul %11, %12, %cst_11 {dimension_numbers = #tpu.dot_dimension_numbers<[1], [0], [0], [1], [0, 0, 1, 1], [], []>} : vector<128x128xbf16>, vector<128x128xbf16>, vector<128x128xf32> -> vector<128x128xf32>
    %14 = arith.truncf %13 : vector<128x128xf32> to vector<128x128xbf16>
    %cst_12 = arith.constant dense<0.000000e+00> : vector<128x128xf32>
    %15 = tpu.matmul %0, %14, %cst_12 {dimension_numbers = #tpu.dot_dimension_numbers<[1], [0], [0], [1], [0, 0, 1, 1], [], []>} : vector<128x128xbf16>, vector<128x128xbf16>, vector<128x128xf32> -> vector<128x128xf32>
    %c0_13 = arith.constant 0 : index
    %c0_14 = arith.constant 0 : index
    %16 = vector.load %arg5[%c0_13, %c0_14] : memref<1x128xf32, #tpu.memory_space<vmem>>, vector<1x128xf32>
    %17 = vector.broadcast %16 : vector<1x128xf32> to vector<128x128xf32>
    %18 = arith.addf %15, %17 : vector<128x128xf32>
    %cst_15 = arith.constant 0.000000e+00 : f32
    %19 = vector.broadcast %cst_15 : f32 to vector<128x128xf32>
    %20 = arith.maximumf %18, %19 : vector<128x128xf32>
    %21 = arith.truncf %20 : vector<128x128xf32> to vector<128x128xbf16>
    %c0_16 = arith.constant 0 : index
    %c0_17 = arith.constant 0 : index
    %22 = vector.load %arg6[%c0_16, %c0_17] : memref<128x128xbf16, #tpu.memory_space<vmem>>, vector<128x128xbf16>
    %cst_18 = arith.constant dense<0.000000e+00> : vector<128x128xf32>
    %23 = tpu.matmul %21, %22, %cst_18 {dimension_numbers = #tpu.dot_dimension_numbers<[1], [0], [0], [1], [0, 0, 1, 1], [], []>} : vector<128x128xbf16>, vector<128x128xbf16>, vector<128x128xf32> -> vector<128x128xf32>
    %24 = arith.truncf %23 : vector<128x128xf32> to vector<128x128xbf16>
    %cst_19 = arith.constant dense<0.000000e+00> : vector<128x128xf32>
    %25 = tpu.matmul %0, %24, %cst_19 {dimension_numbers = #tpu.dot_dimension_numbers<[1], [0], [0], [1], [0, 0, 1, 1], [], []>} : vector<128x128xbf16>, vector<128x128xbf16>, vector<128x128xf32> -> vector<128x128xf32>
    %c0_20 = arith.constant 0 : index
    %c0_21 = arith.constant 0 : index
    %26 = vector.load %arg7[%c0_20, %c0_21] : memref<1x128xf32, #tpu.memory_space<vmem>>, vector<1x128xf32>
    %27 = vector.broadcast %26 : vector<1x128xf32> to vector<128x128xf32>
    %28 = arith.addf %25, %27 : vector<128x128xf32>
    %cst_22 = arith.constant 0.000000e+00 : f32
    %29 = vector.broadcast %cst_22 : f32 to vector<128x128xf32>
    %30 = arith.maximumf %28, %29 : vector<128x128xf32>
    %c0_23 = arith.constant 0 : index
    %c0_24 = arith.constant 0 : index
    %31 = vector.load %arg8[%c0_23, %c0_24] : memref<128x8xf32, #tpu.memory_space<vmem>>, vector<128x8xf32>
    %cst_25 = arith.constant dense<0.000000e+00> : vector<8x128xf32>
    %32 = tpu.matmul %31, %30, %cst_25 {dimension_numbers = #tpu.dot_dimension_numbers<[0], [0], [1], [1], [0, 1, 1, 1], [], []>} : vector<128x8xf32>, vector<128x128xf32>, vector<8x128xf32> -> vector<8x128xf32>
    %33 = arith.truncf %32 : vector<8x128xf32> to vector<8x128xbf16>
    %c0_26 = arith.constant 0 : index
    %c0_27 = arith.constant 0 : index
    %34 = vector.load %arg9[%c0_26, %c0_27] : memref<128x128xbf16, #tpu.memory_space<vmem>>, vector<128x128xbf16>
    %cst_28 = arith.constant dense<0.000000e+00> : vector<8x128xf32>
    %35 = tpu.matmul %33, %34, %cst_28 {dimension_numbers = #tpu.dot_dimension_numbers<[1], [0], [0], [1], [0, 0, 1, 1], [], []>} : vector<8x128xbf16>, vector<128x128xbf16>, vector<8x128xf32> -> vector<8x128xf32>
    %c0_29 = arith.constant 0 : index
    %c0_30 = arith.constant 0 : index
    %36 = vector.load %arg10[%c0_29, %c0_30] : memref<1x128xf32, #tpu.memory_space<vmem>>, vector<1x128xf32>
    %37 = vector.broadcast %36 : vector<1x128xf32> to vector<8x128xf32>
    %38 = arith.addf %35, %37 : vector<8x128xf32>
    %cst_31 = arith.constant 0.000000e+00 : f32
    %39 = vector.broadcast %cst_31 : f32 to vector<8x128xf32>
    %40 = arith.maximumf %38, %39 : vector<8x128xf32>
    %41 = arith.truncf %40 : vector<8x128xf32> to vector<8x128xbf16>
    %c0_32 = arith.constant 0 : index
    %c0_33 = arith.constant 0 : index
    %42 = vector.load %arg11[%c0_32, %c0_33] : memref<128x128xbf16, #tpu.memory_space<vmem>>, vector<128x128xbf16>
    %cst_34 = arith.constant dense<0.000000e+00> : vector<8x128xf32>
    %43 = tpu.matmul %41, %42, %cst_34 {dimension_numbers = #tpu.dot_dimension_numbers<[1], [0], [0], [1], [0, 0, 1, 1], [], []>} : vector<8x128xbf16>, vector<128x128xbf16>, vector<8x128xf32> -> vector<8x128xf32>
    %c0_35 = arith.constant 0 : index
    %c0_36 = arith.constant 0 : index
    %44 = vector.load %arg12[%c0_35, %c0_36] : memref<1x128xf32, #tpu.memory_space<vmem>>, vector<1x128xf32>
    %45 = vector.broadcast %44 : vector<1x128xf32> to vector<8x128xf32>
    %46 = arith.addf %43, %45 : vector<8x128xf32>
    %c0_37 = arith.constant 0 : index
    %c0_38 = arith.constant 0 : index
    %47 = vector.load %arg13[%c0_37, %c0_38] : memref<1x128xf32, #tpu.memory_space<vmem>>, vector<1x128xf32>
    %48 = vector.broadcast %47 : vector<1x128xf32> to vector<8x128xf32>
    %49 = arith.addf %46, %48 : vector<8x128xf32>
    %cst_39 = arith.constant dense<0xFF800000> : vector<8xf32>
    %50 = vector.multi_reduction <maximumf>, %49, %cst_39 [1] : vector<8x128xf32> to vector<8xf32>
    %51 = vector.shape_cast %50 : vector<8xf32> to vector<8x1xf32>
    %52 = vector.broadcast %51 : vector<8x1xf32> to vector<8x128xf32>
    %53 = arith.subf %49, %52 : vector<8x128xf32>
    %54 = math.exp %53 : vector<8x128xf32>
    %cst_40 = arith.constant dense<0.000000e+00> : vector<8xf32>
    %55 = vector.multi_reduction <add>, %54, %cst_40 [1] : vector<8x128xf32> to vector<8xf32>
    %56 = vector.shape_cast %55 : vector<8xf32> to vector<8x1xf32>
    %57 = math.log %56 : vector<8x1xf32>
    %58 = arith.addf %57, %51 : vector<8x1xf32>
    %59 = vector.broadcast %58 : vector<8x1xf32> to vector<8x128xf32>
    %60 = arith.subf %49, %59 : vector<8x128xf32>
    %c0_41 = arith.constant 0 : index
    %c0_42 = arith.constant 0 : index
    %61 = vector.load %arg14[%c0_41, %c0_42] : memref<8x128xf32, #tpu.memory_space<vmem>>, vector<8x128xf32>
    tpu.vector_store %arg14[%c0_41, %c0_42], %60 {strides = array<i32>} : memref<8x128xf32, #tpu.memory_space<vmem>>, vector<8x128xf32>,
    return
  }
}

</mosaic_0001>

<bundles_post_ra>
// kernel: activity_recognition_gcn_forward.1
= control target key start
LH: loop header
LB: loop body
LE: loop exit
PB: predicated region body
PF: predicated region fallthrough
CT: control target
= control target key end

     0   :  { %vm1974_vm0 = vmmov 0   ;;  %s2358_s2 = inlined_call_operand.vmem [shape: bf16[128,128], index: 2, kind: input, shape index: {}]   ;;  %s2359_s1 = inlined_call_operand.vmem [shape: bf16[128,128], index: 1, kind: input, shape index: {}]   ;;  %s2360_s0 = inlined_call_operand.vmem [shape: bf16[128,128], index: 0, kind: input, shape index: {}]   ;;  %s2361_s4 = inlined_call_operand.vmem [shape: bf16[128,128], index: 4, kind: input, shape index: {}]   ;;  %s2362_s3 = inlined_call_operand.vmem [shape: f32[1,128], index: 3, kind: input, shape index: {}]   ;;  %s2363_s6 = inlined_call_operand.vmem [shape: bf16[128,128], index: 6, kind: input, shape index: {}]   ;;  %s2364_s5 = inlined_call_operand.vmem [shape: f32[1,128], index: 5, kind: input, shape index: {}]   ;;  %s2365_s8 = inlined_call_operand.vmem [shape: f32[128,8], index: 8, kind: input, shape index: {}]   ;;  %s2366_s9 = inlined_call_operand.vmem [shape: bf16[128,128], index: 9, kind: input, shape index: {}]   ;;  %s2367_s7 = inlined_call_operand.vmem [shape: f32[1,128], index: 7, kind: input, shape index: {}]   ;;  %s2368_s11 = inlined_call_operand.vmem [shape: bf16[128,128], index: 11, kind: input, shape index: {}]   ;;  %s2369_s10 = inlined_call_operand.vmem [shape: f32[1,128], index: 10, kind: input, shape index: {}]   ;;  %s2370_s12 = inlined_call_operand.vmem [shape: f32[1,128], index: 12, kind: input, shape index: {}]   ;;  %s2371_s13 = inlined_call_operand.vmem [shape: f32[1,128], index: 13, kind: input, shape index: {}]   ;;  %s2372_s14 = inlined_call_operand.vmem [shape: f32[8,128], index: 14, kind: output, shape index: {}]  }
   0x1   :  { %v1913_v0 = vld [vmem:[%s2358_s2] sm:$0xff]   ;;  %v1914_v1 = vld [vmem:[%s2358_s2 + $0x8] sm:$0xff]   ;;  %v1915_v2 = vld [vmem:[%s2358_s2 + $0x10] sm:$0xff]  }
   0x2   :  { %1619 = vmatprep.subr.bf16.mxu0 %v1913_v0  ;;  %v1916_v3 = vld [vmem:[%s2358_s2 + $0x18] sm:$0xff]   ;;  %v1921_v4 = vld [vmem:[%s2359_s1] sm:$0xff]   ;;  %v1918_v6 = vld [vmem:[%s2358_s2 + $0x28] sm:$0xff]  }
   0x3   :  { %1620 = vmatpush3.bf16.msra.mxu0 %v1913_v0  ;;  %1635 = vmatprep.mubr.bf16.mxu0 %v1921_v4  ;;  %v1917_v5 = vld [vmem:[%s2358_s2 + $0x20] sm:$0xff]   ;;  %v1919_v7 = vld [vmem:[%s2358_s2 + $0x30] sm:$0xff]   ;;  %v1920_v8 = vld [vmem:[%s2358_s2 + $0x38] sm:$0xff]  }
   0x4   :  { %1621 = vmatprep.subr.bf16.mxu0 %v1914_v1  ;;  %v1922_v9 = vld [vmem:[%s2359_s1 + $0x8] sm:$0xff]   ;;  %v1923_v10 = vld [vmem:[%s2359_s1 + $0x10] sm:$0xff]   ;;  %v1924_v11 = vld [vmem:[%s2359_s1 + $0x18] sm:$0xff]  }
   0x5   :  { %v1925_v12 = vld [vmem:[%s2359_s1 + $0x20] sm:$0xff]   ;;  %v1926_v13 = vld [vmem:[%s2359_s1 + $0x28] sm:$0xff]   ;;  %v1927_v14 = vld [vmem:[%s2359_s1 + $0x30] sm:$0xff]  }
   0x6   :  { %v1928_v15 = vld [vmem:[%s2359_s1 + $0x38] sm:$0xff]   ;;  %v2102_v16 = vld [vmem:[%s2360_s0] sm:$0xff]   ;;  %v1938_v18 = vld [vmem:[%s2361_s4 + $0x8] sm:$0xff]  }
   0x7   :  { %1622 = vmatpush3.bf16.msra.mxu0 %v1914_v1  ;;  %1667 = vmatprep.mubr.bf16.mxu1 %v2102_v16  ;;  %v1937_v17 = vld [vmem:[%s2361_s4] sm:$0xff]   ;;  %v1939_v19 = vld [vmem:[%s2361_s4 + $0x10] sm:$0xff]   ;;  %v1940_v20 = vld [vmem:[%s2361_s4 + $0x18] sm:$0xff]  }
   0x8   :  { %1623 = vmatprep.subr.bf16.mxu0 %v1915_v2  ;;  %v1941_v21 = vld [vmem:[%s2361_s4 + $0x20] sm:$0xff]   ;;  %v1942_v22 = vld [vmem:[%s2361_s4 + $0x28] sm:$0xff]   ;;  %v2131_v48 = vld [vmem:[%s2360_s0 + $0x10] sm:$0xff]  }
   0x9   :  { %v2126_v47 = vld [vmem:[%s2360_s0 + $0x8] sm:$0xff]   ;;  %v2138_v49 = vld [vmem:[%s2360_s0 + $0x18] sm:$0xff]   ;;  %v2143_v50 = vld [vmem:[%s2360_s0 + $0x20] sm:$0xff]  }
   0xa   :  { %v2150_v51 = vld [vmem:[%s2360_s0 + $0x28] sm:$0xff]   ;;  %v2155_v52 = vld [vmem:[%s2360_s0 + $0x30] sm:$0xff]   ;;  %v2162_v53 = vld [vmem:[%s2360_s0 + $0x38] sm:$0xff]  }
   0xb   :  { %1624 = vmatpush3.bf16.msra.mxu0 %v1915_v2  ;;  %v1943_v54 = vld [vmem:[%s2361_s4 + $0x30] sm:$0xff]   ;;  %v1944_v55 = vld [vmem:[%s2361_s4 + $0x38] sm:$0xff]   ;;  %v1442_v56 = vld [vmem:[%s2362_s3] ss:$0 sm:$0xff] }
   0xc   :  { %1625 = vmatprep.subr.bf16.mxu0 %v1916_v3 }
   0xf   :  { %1626 = vmatpush3.bf16.msra.mxu0 %v1916_v3 }
  0x10   :  { %1627 = vmatprep.subr.bf16.mxu0 %v1917_v5 }
  0x13   :  { %1628 = vmatpush3.bf16.msra.mxu0 %v1917_v5 }
  0x14   :  { %1629 = vmatprep.subr.bf16.mxu0 %v1918_v6 }
  0x17   :  { %1630 = vmatpush3.bf16.msra.mxu0 %v1918_v6 }
  0x18   :  { %1631 = vmatprep.subr.bf16.mxu0 %v1919_v7 }
  0x1b   :  { %1632 = vmatpush3.bf16.msra.mxu0 %v1919_v7 }
  0x1c   :  { %1633 = vmatprep.subr.bf16.mxu0 %v1920_v8 }
  0x1f   :  { %1634 = vmatpush3.bf16.msra.mxu0 %v1920_v8 }
  0x20   :  { %1683 = vmatprep.subr.bf16.mxu0 %v1937_v17 }
  0x22   :  { %1636 = vmatmul.mubr.bf16.vlgmr.msra.gmra.mrb[0].mxu0 %v1922_v9 }
  0x23   :  { %1639 = vmatprep.mubr.bf16.mxu0 %v1923_v10  ;;  %1684 = vmatpush3.bf16.msra.mxu0 %v1937_v17 }
  0x24   :  { %1685 = vmatprep.subr.bf16.mxu0 %v1938_v18 }
  0x27   :  { %1686 = vmatpush3.bf16.msra.mxu0 %v1938_v18 }
  0x28   :  { %1687 = vmatprep.subr.bf16.mxu0 %v1939_v19 }
  0x2a   :  { %1640 = vmatmul.mubr.bf16.gmra.mrb[4].mxu0 %v1924_v11 }
  0x2b   :  { %1643 = vmatprep.mubr.bf16.mxu0 %v1925_v12  ;;  %1688 = vmatpush3.bf16.msra.mxu0 %v1939_v19 }
  0x2c   :  { %1689 = vmatprep.subr.bf16.mxu0 %v1940_v20 }
  0x2f   :  { %1690 = vmatpush3.bf16.msra.mxu0 %v1940_v20 }
  0x30   :  { %1691 = vmatprep.subr.bf16.mxu0 %v1941_v21 }
  0x32   :  { %1644 = vmatmul.mubr.bf16.gmra.mrb[8].mxu0 %v1926_v13 }
  0x33   :  { %1647 = vmatprep.mubr.bf16.mxu0 %v1927_v14  ;;  %1692 = vmatpush3.bf16.msra.mxu0 %v1941_v21 }
  0x34   :  { %1693 = vmatprep.subr.bf16.mxu0 %v1942_v22 }
  0x37   :  { %1694 = vmatpush3.bf16.msra.mxu0 %v1942_v22 }
  0x38   :  { %1695 = vmatprep.subr.bf16.mxu0 %v1943_v54 }
  0x3a   :  { %1648 = vmatmul.mubr.bf16.gmra.mrb[12].mxu0 %v1928_v15 }
  0x3b   :  { %1696 = vmatpush3.bf16.msra.mxu0 %v1943_v54 }
  0x3c   :  { %1697 = vmatprep.subr.bf16.mxu0 %v1944_v55 }
  0x3f   :  { %1698 = vmatpush3.bf16.msra.mxu0 %v1944_v55 }
  0xf5   :  { %v1637_v23 = vpop.f32.mrb[0].mxu0 }
  0xf6   :  { %v226_v24 = vpop.f32.mrb[1].mxu0 }
  0xf7   :  { %v1638_v25 = vpop.f32.mrb[2].mxu0 }
  0xf8   :  { %v290_v26 = vpack.c.bf16 %v1638_v25, %v1637_v23  ;;  %v229_v27 = vpop.f32.mrb[3].mxu0 }
  0xf9   :  { %v289_v28 = vpack.c.bf16 %v229_v27, %v226_v24 }
  0xfb   :  { %1651 = vmatprep.subr.bf16.mxu1 %v289_v28 }
  0xfc   :  { %1652 = vmatpush3.bf16.msra.mxu1 %v289_v28 }
  0xfd   :  { %v1641_v29 = vpop.f32.mrb[4].mxu0  ;;  %1653 = vmatprep.subr.bf16.mxu1 %v290_v26 }
  0xfe   :  { %v242_v30 = vpop.f32.mrb[5].mxu0 }
  0xff   :  { %v1642_v31 = vpop.f32.mrb[6].mxu0 }
 0x100   :  { %v292_v32 = vpack.c.bf16 %v1642_v31, %v1641_v29  ;;  %v245_v33 = vpop.f32.mrb[7].mxu0  ;;  %1654 = vmatpush3.bf16.msra.mxu1 %v290_v26 }
 0x101   :  { %v291_v34 = vpack.c.bf16 %v245_v33, %v242_v30 }
 0x103   :  { %1655 = vmatprep.subr.bf16.mxu1 %v291_v34 }
 0x104   :  { %1656 = vmatpush3.bf16.msra.mxu1 %v291_v34 }
 0x105   :  { %v1645_v35 = vpop.f32.mrb[8].mxu0  ;;  %1657 = vmatprep.subr.bf16.mxu1 %v292_v32 }
 0x106   :  { %v258_v36 = vpop.f32.mrb[9].mxu0 }
 0x107   :  { %v1646_v37 = vpop.f32.mrb[10].mxu0 }
 0x108   :  { %v294_v38 = vpack.c.bf16 %v1646_v37, %v1645_v35  ;;  %v261_v39 = vpop.f32.mrb[11].mxu0  ;;  %1658 = vmatpush3.bf16.msra.mxu1 %v292_v32 }
 0x109   :  { %v293_v40 = vpack.c.bf16 %v261_v39, %v258_v36 }
 0x10b   :  { %1659 = vmatprep.subr.bf16.mxu1 %v293_v40 }
 0x10c   :  { %1660 = vmatpush3.bf16.msra.mxu1 %v293_v40 }
 0x10d   :  { %v1649_v41 = vpop.f32.mrb[12].mxu0  ;;  %1661 = vmatprep.subr.bf16.mxu1 %v294_v38 }
 0x10e   :  { %v274_v42 = vpop.f32.mrb[13].mxu0 }
 0x10f   :  { %v1650_v43 = vpop.f32.mrb[14].mxu0 }
 0x110   :  { %v296_v44 = vpack.c.bf16 %v1650_v43, %v1649_v41  ;;  %v277_v45 = vpop.f32.mrb[15].mxu0  ;;  %1662 = vmatpush3.bf16.msra.mxu1 %v294_v38 }
 0x111   :  { %v295_v46 = vpack.c.bf16 %v277_v45, %v274_v42 }
 0x113   :  { %1663 = vmatprep.subr.bf16.mxu1 %v295_v46 }
 0x114   :  { %1664 = vmatpush3.bf16.msra.mxu1 %v295_v46 }
 0x115   :  { %1665 = vmatprep.subr.bf16.mxu1 %v296_v44 }
 0x118   :  { %1666 = vmatpush3.bf16.msra.mxu1 %v296_v44 }
 0x11b   :  { %1668 = vmatmul.mubr.bf16.vlgmr.msra.gmra.mrb[0].mxu1 %v2126_v47 }
 0x11c   :  { %1671 = vmatprep.mubr.bf16.mxu1 %v2131_v48 }
 0x123   :  { %1672 = vmatmul.mubr.bf16.gmra.mrb[4].mxu1 %v2138_v49 }
 0x124   :  { %1675 = vmatprep.mubr.bf16.mxu1 %v2143_v50 }
 0x12b   :  { %1676 = vmatmul.mubr.bf16.gmra.mrb[8].mxu1 %v2150_v51 }
 0x12c   :  { %1679 = vmatprep.mubr.bf16.mxu1 %v2155_v52 }
 0x133   :  { %1680 = vmatmul.mubr.bf16.gmra.mrb[12].mxu1 %v2162_v53 }
 0x134   :  { %1731 = vmatprep.mubr.bf16.mxu1 %v2102_v16 }
 0x1ee   :  { %v1669_v57 = vpop.f32.mrb[0].mxu1 }
 0x1ef   :  { %v395_v58 = vadd.f32 %v1669_v57, %v1442_v56  ;;  %v386_v59 = vpop.f32.mrb[1].mxu1 }
 0x1f0   :  { %v387_v60 = vadd.f32 %v1442_v56, %v386_v59  ;;  %v1670_v61 = vpop.f32.mrb[2].mxu1  ;;  %v1946_v59 = vld [vmem:[%s2363_s6 + $0x8] sm:$0xff]  }
 0x1f1   :  { %v398_v62 = vadd.f32 %v1670_v61, %v1442_v56  ;;  %v389_v63 = vpop.f32.mrb[3].mxu1  ;;  %v451_v1 = vmax.f32 %v395_v58, 0.0  ;;  %v1945_v58 = vld [vmem:[%s2363_s6] sm:$0xff]  }
 0x1f2   :  { %v390_v0 = vadd.f32 %v1442_v56, %v389_v63  ;;  %v449_v3 = vmax.f32 %v387_v60, 0.0  ;;  %1747 = vmatprep.subr.bf16.mxu0 %v1945_v58  ;;  %v1948_v60 = vld [vmem:[%s2363_s6 + $0x18] sm:$0xff]   ;;  %v1949_v61 = vld [vmem:[%s2363_s6 + $0x20] sm:$0xff]  }
 0x1f3   :  { %v452_v2 = vmax.f32 %v398_v62, 0.0  ;;  %v1950_v62 = vld [vmem:[%s2363_s6 + $0x28] sm:$0xff]  }
 0x1f4   :  { %v450_v4 = vmax.f32 %v390_v0, 0.0 }
 0x1f5   :  { %v466_v5 = vpack.c.bf16 %v452_v2, %v451_v1 }
 0x1f6   :  { %v465_v6 = vpack.c.bf16 %v450_v4, %v449_v3  ;;  %v1673_v7 = vpop.f32.mrb[4].mxu1 }
 0x1f7   :  { %v411_v8 = vadd.f32 %v1673_v7, %v1442_v56  ;;  %v402_v9 = vpop.f32.mrb[5].mxu1 }
 0x1f8   :  { %v403_v10 = vadd.f32 %v1442_v56, %v402_v9  ;;  %v1674_v11 = vpop.f32.mrb[6].mxu1  ;;  %1699 = vmatprep.mubr.bf16.mxu0 %v465_v6 }
 0x1f9   :  { %v414_v12 = vadd.f32 %v1674_v11, %v1442_v56  ;;  %v405_v13 = vpop.f32.mrb[7].mxu1  ;;  %1700 = vmatmul.mubr.bf16.vlgmr.msra.gmra.mrb[16].mxu0 %v466_v5  ;;  %v455_v15 = vmax.f32 %v411_v8, 0.0 }
 0x1fa   :  { %v406_v14 = vadd.f32 %v1442_v56, %v405_v13  ;;  %v453_v18 = vmax.f32 %v403_v10, 0.0  ;;  %1748 = vmatpush3.bf16.msra.mxu0 %v1945_v58 }
 0x1fb   :  { %v456_v17 = vmax.f32 %v414_v12, 0.0  ;;  %1749 = vmatprep.subr.bf16.mxu0 %v1946_v59 }
 0x1fc   :  { %v454_v19 = vmax.f32 %v406_v14, 0.0 }
 0x1fd   :  { %v468_v20 = vpack.c.bf16 %v456_v17, %v455_v15 }
 0x1fe   :  { %v467_v21 = vpack.c.bf16 %v454_v19, %v453_v18  ;;  %v1677_v22 = vpop.f32.mrb[8].mxu1  ;;  %1750 = vmatpush3.bf16.msra.mxu0 %v1946_v59 }
 0x1ff   :  { %v427_v23 = vadd.f32 %v1677_v22, %v1442_v56  ;;  %v418_v24 = vpop.f32.mrb[9].mxu1 }
 0x200   :  { %v419_v25 = vadd.f32 %v1442_v56, %v418_v24  ;;  %v1678_v26 = vpop.f32.mrb[10].mxu1  ;;  %1703 = vmatprep.mubr.bf16.mxu0 %v467_v21  ;;  %v1951_v24 = vld [vmem:[%s2363_s6 + $0x30] sm:$0xff]  }
 0x201   :  { %v430_v27 = vadd.f32 %v1678_v26, %v1442_v56  ;;  %v421_v28 = vpop.f32.mrb[11].mxu1  ;;  %1704 = vmatmul.mubr.bf16.gmra.mrb[20].mxu0 %v468_v20  ;;  %v459_v30 = vmax.f32 %v427_v23, 0.0  ;;  %v1459_v26 = vld [vmem:[%s2364_s5] ss:$0 sm:$0xff] }
 0x202   :  { %v422_v29 = vadd.f32 %v1442_v56, %v421_v28  ;;  %v457_v32 = vmax.f32 %v419_v25, 0.0  ;;  %v1952_v25 = vld [vmem:[%s2363_s6 + $0x38] sm:$0xff]  }
 0x203   :  { %v460_v31 = vmax.f32 %v430_v27, 0.0 }
 0x204   :  { %v458_v33 = vmax.f32 %v422_v29, 0.0 }
 0x205   :  { %v470_v34 = vpack.c.bf16 %v460_v31, %v459_v30 }
 0x206   :  { %v469_v35 = vpack.c.bf16 %v458_v33, %v457_v32  ;;  %v1681_v36 = vpop.f32.mrb[12].mxu1 }
 0x207   :  { %v443_v37 = vadd.f32 %v1681_v36, %v1442_v56  ;;  %v434_v38 = vpop.f32.mrb[13].mxu1 }
 0x208   :  { %v435_v39 = vadd.f32 %v1442_v56, %v434_v38  ;;  %v1682_v40 = vpop.f32.mrb[14].mxu1  ;;  %1707 = vmatprep.mubr.bf16.mxu0 %v469_v35 }
 0x209   :  { %v446_v41 = vadd.f32 %v1682_v40, %v1442_v56  ;;  %v437_v42 = vpop.f32.mrb[15].mxu1  ;;  %1708 = vmatmul.mubr.bf16.gmra.mrb[24].mxu0 %v470_v34  ;;  %v463_v44 = vmax.f32 %v443_v37, 0.0 }
 0x20a   :  { %v438_v43 = vadd.f32 %v1442_v56, %v437_v42  ;;  %v461_v46 = vmax.f32 %v435_v39, 0.0  ;;  %v1947_v56 = vld [vmem:[%s2363_s6 + $0x10] sm:$0xff]  }
 0x20b   :  { %v464_v45 = vmax.f32 %v446_v41, 0.0  ;;  %1751 = vmatprep.subr.bf16.mxu0 %v1947_v56 }
 0x20c   :  { %v462_v54 = vmax.f32 %v438_v43, 0.0  ;;  %1752 = vmatpush3.bf16.msra.mxu0 %v1947_v56 }
 0x20d   :  { %v472_v55 = vpack.c.bf16 %v464_v45, %v463_v44  ;;  %1753 = vmatprep.subr.bf16.mxu0 %v1948_v60 }
 0x20e   :  { %v471_v57 = vpack.c.bf16 %v462_v54, %v461_v46 }
 0x210   :  { %1711 = vmatprep.mubr.bf16.mxu0 %v471_v57  ;;  %1754 = vmatpush3.bf16.msra.mxu0 %v1948_v60 }
 0x211   :  { %1712 = vmatmul.mubr.bf16.gmra.mrb[28].mxu0 %v472_v55  ;;  %1755 = vmatprep.subr.bf16.mxu0 %v1949_v61 }
 0x214   :  { %1756 = vmatpush3.bf16.msra.mxu0 %v1949_v61 }
 0x215   :  { %1757 = vmatprep.subr.bf16.mxu0 %v1950_v62 }
 0x218   :  { %1758 = vmatpush3.bf16.msra.mxu0 %v1950_v62 }
 0x219   :  { %1759 = vmatprep.subr.bf16.mxu0 %v1951_v24 }
 0x21c   :  { %1760 = vmatpush3.bf16.msra.mxu0 %v1951_v24 }
 0x21d   :  { %1761 = vmatprep.subr.bf16.mxu0 %v1952_v25 }
 0x220   :  { %1762 = vmatpush3.bf16.msra.mxu0 %v1952_v25 }
 0x2cc   :  { %v1701_v63 = vpop.f32.mrb[16].mxu0 }
 0x2cd   :  { %v571_v0 = vpop.f32.mrb[17].mxu0 }
 0x2ce   :  { %v1702_v1 = vpop.f32.mrb[18].mxu0 }
 0x2cf   :  { %v635_v2 = vpack.c.bf16 %v1702_v1, %v1701_v63  ;;  %v574_v3 = vpop.f32.mrb[19].mxu0 }
 0x2d0   :  { %v634_v4 = vpack.c.bf16 %v574_v3, %v571_v0 }
 0x2d2   :  { %1715 = vmatprep.subr.bf16.mxu1 %v634_v4 }
 0x2d3   :  { %1716 = vmatpush3.bf16.msra.mxu1 %v634_v4 }
 0x2d4   :  { %v1705_v5 = vpop.f32.mrb[20].mxu0  ;;  %1717 = vmatprep.subr.bf16.mxu1 %v635_v2 }
 0x2d5   :  { %v587_v6 = vpop.f32.mrb[21].mxu0 }
 0x2d6   :  { %v1706_v7 = vpop.f32.mrb[22].mxu0 }
 0x2d7   :  { %v637_v8 = vpack.c.bf16 %v1706_v7, %v1705_v5  ;;  %v590_v9 = vpop.f32.mrb[23].mxu0  ;;  %1718 = vmatpush3.bf16.msra.mxu1 %v635_v2 }
 0x2d8   :  { %v636_v10 = vpack.c.bf16 %v590_v9, %v587_v6 }
 0x2da   :  { %1719 = vmatprep.subr.bf16.mxu1 %v636_v10 }
 0x2db   :  { %1720 = vmatpush3.bf16.msra.mxu1 %v636_v10 }
 0x2dc   :  { %v1709_v11 = vpop.f32.mrb[24].mxu0  ;;  %1721 = vmatprep.subr.bf16.mxu1 %v637_v8 }
 0x2dd   :  { %v603_v12 = vpop.f32.mrb[25].mxu0 }
 0x2de   :  { %v1710_v13 = vpop.f32.mrb[26].mxu0 }
 0x2df   :  { %v639_v14 = vpack.c.bf16 %v1710_v13, %v1709_v11  ;;  %v606_v15 = vpop.f32.mrb[27].mxu0  ;;  %1722 = vmatpush3.bf16.msra.mxu1 %v637_v8 }
 0x2e0   :  { %v638_v17 = vpack.c.bf16 %v606_v15, %v603_v12 }
 0x2e2   :  { %1723 = vmatprep.subr.bf16.mxu1 %v638_v17 }
 0x2e3   :  { %1724 = vmatpush3.bf16.msra.mxu1 %v638_v17 }
 0x2e4   :  { %v1713_v18 = vpop.f32.mrb[28].mxu0  ;;  %1725 = vmatprep.subr.bf16.mxu1 %v639_v14 }
 0x2e5   :  { %v619_v19 = vpop.f32.mrb[29].mxu0 }
 0x2e6   :  { %v1714_v20 = vpop.f32.mrb[30].mxu0 }
 0x2e7   :  { %v641_v21 = vpack.c.bf16 %v1714_v20, %v1713_v18  ;;  %v622_v22 = vpop.f32.mrb[31].mxu0  ;;  %1726 = vmatpush3.bf16.msra.mxu1 %v639_v14 }
 0x2e8   :  { %v640_v23 = vpack.c.bf16 %v622_v22, %v619_v19 }
 0x2ea   :  { %1727 = vmatprep.subr.bf16.mxu1 %v640_v23 }
 0x2eb   :  { %1728 = vmatpush3.bf16.msra.mxu1 %v640_v23 }
 0x2ec   :  { %1729 = vmatprep.subr.bf16.mxu1 %v641_v21 }
 0x2ef   :  { %1730 = vmatpush3.bf16.msra.mxu1 %v641_v21 }
 0x2f2   :  { %1732 = vmatmul.mubr.bf16.vlgmr.msra.gmra.mrb[16].mxu1 %v2126_v47 }
 0x2f3   :  { %1735 = vmatprep.mubr.bf16.mxu1 %v2131_v48 }
 0x2fa   :  { %1736 = vmatmul.mubr.bf16.gmra.mrb[20].mxu1 %v2138_v49 }
 0x2fb   :  { %1739 = vmatprep.mubr.bf16.mxu1 %v2143_v50 }
 0x302   :  { %1740 = vmatmul.mubr.bf16.gmra.mrb[24].mxu1 %v2150_v51 }
 0x303   :  { %1743 = vmatprep.mubr.bf16.mxu1 %v2155_v52 }
 0x30a   :  { %1744 = vmatmul.mubr.bf16.gmra.mrb[28].mxu1 %v2162_v53 }
 0x30b   :  { %1795 = vmatprep.mubr.bf16.mxu1 %v2102_v16 }
 0x3c5   :  { %v1733_v27 = vpop.f32.mrb[16].mxu1 }
 0x3c6   :  { %v692_v28 = vadd.f32 %v1733_v27, %v1459_v26  ;;  %v683_v29 = vpop.f32.mrb[17].mxu1  ;;  %v1059_v27 = vld [vmem:[%s2365_s8] sm:$0xff] }
 0x3c7   :  { %v684_v16 = vadd.f32 %v1459_v26, %v683_v29  ;;  %v1734_v30 = vpop.f32.mrb[18].mxu1  ;;  %1075 = vxpose.xlu0.b32.start [1/16] (narrow) %v1059_v27, 8  ;;  %v1062_v29 = vld [vmem:[%s2365_s8 + $0x18] sm:$0xff] }
 0x3c8   :  { %v695_v31 = vadd.f32 %v1734_v30, %v1459_v26  ;;  %v686_v32 = vpop.f32.mrb[19].mxu1  ;;  %v748_v34 = vmax.f32 %v692_v28, 0.0  ;;  %v1060_v28 = vld [vmem:[%s2365_s8 + $0x8] sm:$0xff] }
 0x3c9   :  { %v687_v33 = vadd.f32 %v1459_v26, %v686_v32  ;;  %v746_v36 = vmax.f32 %v684_v16, 0.0  ;;  %v1063_v16 = vld [vmem:[%s2365_s8 + $0x20] sm:$0xff]  ;;  %v1064_v30 = vld [vmem:[%s2365_s8 + $0x28] sm:$0xff]  ;;  %v1066_v32 = vld [vmem:[%s2365_s8 + $0x38] sm:$0xff] }
 0x3ca   :  { %v749_v35 = vmax.f32 %v695_v31, 0.0  ;;  %v1065_v31 = vld [vmem:[%s2365_s8 + $0x30] sm:$0xff] }
 0x3cb   :  { %v747_v37 = vmax.f32 %v687_v33, 0.0  ;;  %1076 = vxpose.xlu0.b32.cont [2/16] (narrow) %v1060_v28, 8  ;;  %v1067_v33 = vld [vmem:[%s2365_s8 + $0x40] sm:$0xff] }
 0x3cc   :  { %v763_v38 = vpack.c.bf16 %v749_v35, %v748_v34  ;;  %v1068_v34 = vld [vmem:[%s2365_s8 + $0x48] sm:$0xff]  ;;  %v1069_v35 = vld [vmem:[%s2365_s8 + $0x50] sm:$0xff] }
 0x3cd   :  { %v762_v39 = vpack.c.bf16 %v747_v37, %v746_v36  ;;  %v1737_v40 = vpop.f32.mrb[20].mxu1  ;;  %v1070_v36 = vld [vmem:[%s2365_s8 + $0x58] sm:$0xff]  ;;  %v1071_v37 = vld [vmem:[%s2365_s8 + $0x60] sm:$0xff] }
 0x3ce   :  { %v708_v41 = vadd.f32 %v1737_v40, %v1459_v26  ;;  %v699_v42 = vpop.f32.mrb[21].mxu1  ;;  %v1074_v40 = vld [vmem:[%s2365_s8 + $0x78] sm:$0xff] }
 0x3cf   :  { %v700_v43 = vadd.f32 %v1459_v26, %v699_v42  ;;  %v1738_v44 = vpop.f32.mrb[22].mxu1  ;;  %1763 = vmatprep.mubr.bf16.mxu0 %v762_v39  ;;  %v1073_v39 = vld [vmem:[%s2365_s8 + $0x70] sm:$0xff] }
 0x3d0   :  { %v711_v45 = vadd.f32 %v1738_v44, %v1459_v26  ;;  %v702_v46 = vpop.f32.mrb[23].mxu1  ;;  %1764 = vmatmul.mubr.bf16.vlgmr.msra.gmra.mrb[32].mxu0 %v763_v38  ;;  %v752_v55 = vmax.f32 %v708_v41, 0.0  ;;  %v1072_v38 = vld [vmem:[%s2365_s8 + $0x68] sm:$0xff] }
 0x3d1   :  { %v703_v54 = vadd.f32 %v1459_v26, %v702_v46  ;;  %v750_v58 = vmax.f32 %v700_v43, 0.0 }
 0x3d2   :  { %v753_v57 = vmax.f32 %v711_v45, 0.0 }
 0x3d3   :  { %v751_v59 = vmax.f32 %v703_v54, 0.0 }
 0x3d4   :  { %v765_v56 = vpack.c.bf16 %v753_v57, %v752_v55 }
 0x3d5   :  { %v764_v60 = vpack.c.bf16 %v751_v59, %v750_v58  ;;  %v1741_v61 = vpop.f32.mrb[24].mxu1 }
 0x3d6   :  { %v724_v62 = vadd.f32 %v1741_v61, %v1459_v26  ;;  %v715_v63 = vpop.f32.mrb[25].mxu1 }
 0x3d7   :  { %v716_v0 = vadd.f32 %v1459_v26, %v715_v63  ;;  %v1742_v1 = vpop.f32.mrb[26].mxu1  ;;  %1767 = vmatprep.mubr.bf16.mxu0 %v764_v60 }
 0x3d8   :  { %v727_v2 = vadd.f32 %v1742_v1, %v1459_v26  ;;  %v718_v3 = vpop.f32.mrb[27].mxu1  ;;  %1768 = vmatmul.mubr.bf16.gmra.mrb[36].mxu0 %v765_v56  ;;  %v756_v5 = vmax.f32 %v724_v62, 0.0 }
 0x3d9   :  { %v719_v4 = vadd.f32 %v1459_v26, %v718_v3  ;;  %v754_v7 = vmax.f32 %v716_v0, 0.0 }
 0x3da   :  { %v757_v6 = vmax.f32 %v727_v2, 0.0 }
 0x3db   :  { %v755_v8 = vmax.f32 %v719_v4, 0.0 }
 0x3dc   :  { %v767_v9 = vpack.c.bf16 %v757_v6, %v756_v5 }
 0x3dd   :  { %v766_v10 = vpack.c.bf16 %v755_v8, %v754_v7  ;;  %v1745_v11 = vpop.f32.mrb[28].mxu1  ;;  %v1973_v8 = vmov 0.0|0.0  }
 0x3de   :  { %v740_v12 = vadd.f32 %v1745_v11, %v1459_v26  ;;  %v731_v13 = vpop.f32.mrb[29].mxu1  ;;  %1886 = vmatprep.subr.bf16.mxu0 %v1973_v8 }
 0x3df   :  { %v732_v14 = vadd.f32 %v1459_v26, %v731_v13  ;;  %v1746_v15 = vpop.f32.mrb[30].mxu1  ;;  %1771 = vmatprep.mubr.bf16.mxu0 %v766_v10  ;;  %v1468_v10 = vld [vmem:[%s2367_s7] ss:$0 sm:$0xff] }
 0x3e0   :  { %v743_v17 = vadd.f32 %v1746_v15, %v1459_v26  ;;  %v734_v18 = vpop.f32.mrb[31].mxu1  ;;  %1772 = vmatmul.mubr.bf16.gmra.mrb[40].mxu0 %v767_v9  ;;  %v760_v20 = vmax.f32 %v740_v12, 0.0  ;;  %v1975_v9 = vmov 0.0  }
 0x3e1   :  { %v735_v19 = vadd.f32 %v1459_v26, %v734_v18  ;;  %v758_v22 = vmax.f32 %v732_v14, 0.0  ;;  %v1061_v26 = vld [vmem:[%s2365_s8 + $0x10] sm:$0xff] }
 0x3e2   :  { %v761_v21 = vmax.f32 %v743_v17, 0.0  ;;  %1077 = vxpose.xlu0.b32.cont [3/16] (narrow) %v1061_v26, 8 }
 0x3e3   :  { %v759_v23 = vmax.f32 %v735_v19, 0.0 }
 0x3e4   :  { %v769_v24 = vpack.c.bf16 %v761_v21, %v760_v20 }
 0x3e5   :  { %v768_v25 = vpack.c.bf16 %v759_v23, %v758_v22 }
 0x3e6   :  { %1078 = vxpose.xlu0.b32.cont [4/16] (narrow) %v1062_v29, 8 }
 0x3e7   :  { %1775 = vmatprep.mubr.bf16.mxu0 %v768_v25 }
 0x3e8   :  { %1776 = vmatmul.mubr.bf16.gmra.mrb[44].mxu0 %v769_v24 }
 0x3e9   :  { %1843 = vmatprep.mubr.msk.f32.mxu0 %vm1974_vm0, %v1975_v9 }
 0x3ea   :  { %1079 = vxpose.xlu0.b32.cont [5/16] (narrow) %v1063_v16, 8 }
 0x3ee   :  { %1080 = vxpose.xlu0.b32.cont [6/16] (narrow) %v1064_v30, 8 }
 0x3f2   :  { %1081 = vxpose.xlu0.b32.cont [7/16] (narrow) %v1065_v31, 8 }
 0x3f6   :  { %1082 = vxpose.xlu0.b32.cont [8/16] (narrow) %v1066_v32, 8 }
 0x3fa   :  { %1083 = vxpose.xlu0.b32.cont [9/16] (narrow) %v1067_v33, 8 }
 0x3fe   :  { %1084 = vxpose.xlu0.b32.cont [10/16] (narrow) %v1068_v34, 8 }
 0x402   :  { %1085 = vxpose.xlu0.b32.cont [11/16] (narrow) %v1069_v35, 8 }
 0x406   :  { %1086 = vxpose.xlu0.b32.cont [12/16] (narrow) %v1070_v36, 8 }
 0x40a   :  { %1087 = vxpose.xlu0.b32.cont [13/16] (narrow) %v1071_v37, 8 }
 0x40e   :  { %1088 = vxpose.xlu0.b32.cont [14/16] (narrow) %v1072_v38, 8 }
 0x412   :  { %1089 = vxpose.xlu0.b32.cont [15/16] (narrow) %v1073_v39, 8 }
 0x416   :  { %1090 = vxpose.xlu0.b32.end [16/16] (narrow) %v1074_v40, 8 }
 0x4a3   :  { %v1765_v41 = vpop.f32.mrb[32].mxu0 }
 0x4a4   :  { %v868_v42 = vpop.f32.mrb[33].mxu0 }
 0x4a5   :  { %v1766_v43 = vpop.f32.mrb[34].mxu0 }
 0x4a6   :  { %v932_v44 = vpack.c.bf16 %v1766_v43, %v1765_v41  ;;  %v871_v45 = vpop.f32.mrb[35].mxu0 }
 0x4a7   :  { %v931_v46 = vpack.c.bf16 %v871_v45, %v868_v42 }
 0x4a9   :  { %1779 = vmatprep.subr.bf16.mxu1 %v931_v46 }
 0x4aa   :  { %1780 = vmatpush3.bf16.msra.mxu1 %v931_v46 }
 0x4ab   :  { %v1769_v54 = vpop.f32.mrb[36].mxu0  ;;  %1781 = vmatprep.subr.bf16.mxu1 %v932_v44 }
 0x4ac   :  { %v884_v55 = vpop.f32.mrb[37].mxu0 }
 0x4ad   :  { %v1770_v57 = vpop.f32.mrb[38].mxu0 }
 0x4ae   :  { %v934_v58 = vpack.c.bf16 %v1770_v57, %v1769_v54  ;;  %v887_v59 = vpop.f32.mrb[39].mxu0  ;;  %1782 = vmatpush3.bf16.msra.mxu1 %v932_v44 }
 0x4af   :  { %v933_v56 = vpack.c.bf16 %v887_v59, %v884_v55 }
 0x4b1   :  { %1783 = vmatprep.subr.bf16.mxu1 %v933_v56 }
 0x4b2   :  { %1784 = vmatpush3.bf16.msra.mxu1 %v933_v56 }
 0x4b3   :  { %v1773_v60 = vpop.f32.mrb[40].mxu0  ;;  %1785 = vmatprep.subr.bf16.mxu1 %v934_v58 }
 0x4b4   :  { %v900_v61 = vpop.f32.mrb[41].mxu0 }
 0x4b5   :  { %v1774_v62 = vpop.f32.mrb[42].mxu0 }
 0x4b6   :  { %v936_v63 = vpack.c.bf16 %v1774_v62, %v1773_v60  ;;  %v903_v0 = vpop.f32.mrb[43].mxu0  ;;  %1786 = vmatpush3.bf16.msra.mxu1 %v934_v58 }
 0x4b7   :  { %v935_v1 = vpack.c.bf16 %v903_v0, %v900_v61 }
 0x4b9   :  { %1787 = vmatprep.subr.bf16.mxu1 %v935_v1 }
 0x4ba   :  { %1788 = vmatpush3.bf16.msra.mxu1 %v935_v1 }
 0x4bb   :  { %v1777_v2 = vpop.f32.mrb[44].mxu0  ;;  %1789 = vmatprep.subr.bf16.mxu1 %v936_v63 }
 0x4bc   :  { %v916_v3 = vpop.f32.mrb[45].mxu0 }
 0x4bd   :  { %v1778_v4 = vpop.f32.mrb[46].mxu0 }
 0x4be   :  { %v938_v5 = vpack.c.bf16 %v1778_v4, %v1777_v2  ;;  %v919_v6 = vpop.f32.mrb[47].mxu0  ;;  %1790 = vmatpush3.bf16.msra.mxu1 %v936_v63 }
 0x4bf   :  { %v937_v7 = vpack.c.bf16 %v919_v6, %v916_v3 }
 0x4c1   :  { %1791 = vmatprep.subr.bf16.mxu1 %v937_v7 }
 0x4c2   :  { %1792 = vmatpush3.bf16.msra.mxu1 %v937_v7 }
 0x4c3   :  { %1793 = vmatprep.subr.bf16.mxu1 %v938_v5 }
 0x4c6   :  { %1794 = vmatpush3.bf16.msra.mxu1 %v938_v5 }
 0x4c7   :  { %1846 = vmatprep.subr.bf16.mxu1 %v1975_v9 }
 0x4c9   :  { %1796 = vmatmul.mubr.bf16.vlgmr.msra.gmra.mrb[32].mxu1 %v2126_v47  ;;  %v1953_v47 = vld [vmem:[%s2366_s9] sm:$0xff]  }
 0x4ca   :  { %1799 = vmatprep.mubr.bf16.mxu1 %v2131_v48  ;;  %1847 = vmatpush3.bf16.msra.mxu1 %v1953_v47  ;;  %v1954_v48 = vld [vmem:[%s2366_s9 + $0x8] sm:$0xff]  }
 0x4cb   :  { %1848 = vmatprep.subr.bf16.mxu1 %v1975_v9 }
 0x4ce   :  { %1849 = vmatpush3.bf16.msra.mxu1 %v1954_v48 }
 0x4cf   :  { %1850 = vmatprep.subr.bf16.mxu1 %v1975_v9 }
 0x4d1   :  { %1800 = vmatmul.mubr.bf16.gmra.mrb[36].mxu1 %v2138_v49  ;;  %v1955_v49 = vld [vmem:[%s2366_s9 + $0x10] sm:$0xff]  }
 0x4d2   :  { %1803 = vmatprep.mubr.bf16.mxu1 %v2143_v50  ;;  %1851 = vmatpush3.bf16.msra.mxu1 %v1955_v49  ;;  %v1956_v50 = vld [vmem:[%s2366_s9 + $0x18] sm:$0xff]   ;;  %v1091_v49 = vpop.trf.xlu0 }
 0x4d3   :  { %1852 = vmatprep.subr.bf16.mxu1 %v1975_v9 }
 0x4d6   :  { %1853 = vmatpush3.bf16.msra.mxu1 %v1956_v50  ;;  %v1960_v50 = vld [vmem:[%s2366_s9 + $0x38] sm:$0xff]  }
 0x4d7   :  { %1854 = vmatprep.subr.bf16.mxu1 %v1975_v9 }
 0x4d9   :  { %1804 = vmatmul.mubr.bf16.gmra.mrb[40].mxu1 %v2150_v51  ;;  %v1957_v51 = vld [vmem:[%s2366_s9 + $0x20] sm:$0xff]  }
 0x4da   :  { %1807 = vmatprep.mubr.bf16.mxu1 %v2155_v52  ;;  %1855 = vmatpush3.bf16.msra.mxu1 %v1957_v51  ;;  %v1958_v52 = vld [vmem:[%s2366_s9 + $0x28] sm:$0xff]   ;;  %v1961_v51 = vld [vmem:[%s2368_s11] sm:$0xff]  }
 0x4db   :  { %1856 = vmatprep.subr.bf16.mxu1 %v1975_v9 }
 0x4de   :  { %1857 = vmatpush3.bf16.msra.mxu1 %v1958_v52  ;;  %v1963_v52 = vld [vmem:[%s2368_s11 + $0x10] sm:$0xff]  }
 0x4df   :  { %1858 = vmatprep.subr.bf16.mxu1 %v1975_v9 }
 0x4e1   :  { %1808 = vmatmul.mubr.bf16.gmra.mrb[44].mxu1 %v2162_v53  ;;  %v1959_v53 = vld [vmem:[%s2366_s9 + $0x30] sm:$0xff]  }
 0x4e2   :  { %1862 = vmatprep.mubr.msk.bf16.mxu1 %vm1974_vm0, %v1975_v9  ;;  %1859 = vmatpush3.bf16.msra.mxu1 %v1959_v53  ;;  %v1964_v53 = vld [vmem:[%s2368_s11 + $0x18] sm:$0xff]  }
 0x4e3   :  { %1860 = vmatprep.subr.bf16.mxu1 %v1975_v9 }
 0x4e6   :  { %1861 = vmatpush3.bf16.msra.mxu1 %v1960_v50 }
 0x59c   :  { %v1797_v11 = vpop.f32.mrb[32].mxu1 }
 0x59d   :  { %v989_v12 = vadd.f32 %v1797_v11, %v1468_v10  ;;  %v980_v13 = vpop.f32.mrb[33].mxu1  ;;  %v1966_v11 = vld [vmem:[%s2368_s11 + $0x28] sm:$0xff]  }
 0x59e   :  { %v981_v14 = vadd.f32 %v1468_v10, %v980_v13  ;;  %v1798_v15 = vpop.f32.mrb[34].mxu1 }
 0x59f   :  { %v992_v17 = vadd.f32 %v1798_v15, %v1468_v10  ;;  %v983_v18 = vpop.f32.mrb[35].mxu1  ;;  %v1045_v20 = vmax.f32 %v989_v12, 0.0  ;;  %v1967_v15 = vld [vmem:[%s2368_s11 + $0x30] sm:$0xff]  }
 0x5a0   :  { %v984_v19 = vadd.f32 %v1468_v10, %v983_v18  ;;  %v1043_v22 = vmax.f32 %v981_v14, 0.0  ;;  %v1469_v18 = vld [vmem:[%s2369_s10] ss:$0 sm:$0xff] }
 0x5a1   :  { %v1046_v21 = vmax.f32 %v992_v17, 0.0  ;;  %v1968_v17 = vld [vmem:[%s2368_s11 + $0x38] sm:$0xff]  }
 0x5a2   :  { %v1044_v23 = vmax.f32 %v984_v19, 0.0 }
 0x5a3   :  { %v1890_v24 = vpack.c.bf16 %v1046_v21, %v1045_v20 }
 0x5a4   :  { %v1887_v25 = vpack.c.bf16 %v1044_v23, %v1043_v22  ;;  %v1801_v27 = vpop.f32.mrb[36].mxu1 }
 0x5a5   :  { %v1005_v28 = vadd.f32 %v1801_v27, %v1468_v10  ;;  %v996_v26 = vpop.f32.mrb[37].mxu1 }
 0x5a6   :  { %v997_v29 = vadd.f32 %v1468_v10, %v996_v26  ;;  %v1802_v16 = vpop.f32.mrb[38].mxu1  ;;  %1888 = vmatpush3.bf16.msra.mxu0 %v1887_v25 }
 0x5a7   :  { %v1008_v30 = vadd.f32 %v1802_v16, %v1468_v10  ;;  %v999_v31 = vpop.f32.mrb[39].mxu1  ;;  %1889 = vmatprep.subr.bf16.mxu0 %v1973_v8  ;;  %v1049_v33 = vmax.f32 %v1005_v28, 0.0  ;;  %v1487_v28 = vld [vmem:[%s2371_s13] ss:$0 sm:$0xff] }
 0x5a8   :  { %v1000_v32 = vadd.f32 %v1468_v10, %v999_v31  ;;  %v1047_v35 = vmax.f32 %v997_v29, 0.0 }
 0x5a9   :  { %v1050_v34 = vmax.f32 %v1008_v30, 0.0 }
 0x5aa   :  { %v1048_v36 = vmax.f32 %v1000_v32, 0.0  ;;  %1891 = vmatpush3.bf16.msra.mxu0 %v1890_v24 }
 0x5ab   :  { %v1896_v37 = vpack.c.bf16 %v1050_v34, %v1049_v33  ;;  %1892 = vmatprep.subr.bf16.mxu0 %v1973_v8 }
 0x5ac   :  { %v1893_v38 = vpack.c.bf16 %v1048_v36, %v1047_v35  ;;  %v1805_v39 = vpop.f32.mrb[40].mxu1 }
 0x5ad   :  { %v1021_v40 = vadd.f32 %v1805_v39, %v1468_v10  ;;  %v1012_v41 = vpop.f32.mrb[41].mxu1 }
 0x5ae   :  { %v1013_v42 = vadd.f32 %v1468_v10, %v1012_v41  ;;  %v1806_v43 = vpop.f32.mrb[42].mxu1  ;;  %1894 = vmatpush3.bf16.msra.mxu0 %v1893_v38 }
 0x5af   :  { %v1024_v44 = vadd.f32 %v1806_v43, %v1468_v10  ;;  %v1015_v45 = vpop.f32.mrb[43].mxu1  ;;  %1895 = vmatprep.subr.bf16.mxu0 %v1973_v8  ;;  %v1053_v54 = vmax.f32 %v1021_v40, 0.0 }
 0x5b0   :  { %v1016_v46 = vadd.f32 %v1468_v10, %v1015_v45  ;;  %v1051_v57 = vmax.f32 %v1013_v42, 0.0 }
 0x5b1   :  { %v1054_v55 = vmax.f32 %v1024_v44, 0.0 }
 0x5b2   :  { %v1052_v58 = vmax.f32 %v1016_v46, 0.0  ;;  %1897 = vmatpush3.bf16.msra.mxu0 %v1896_v37 }
 0x5b3   :  { %v1902_v59 = vpack.c.bf16 %v1054_v55, %v1053_v54  ;;  %1898 = vmatprep.subr.bf16.mxu0 %v1973_v8 }
 0x5b4   :  { %v1899_v56 = vpack.c.bf16 %v1052_v58, %v1051_v57  ;;  %v1809_v60 = vpop.f32.mrb[44].mxu1 }
 0x5b5   :  { %v1037_v61 = vadd.f32 %v1809_v60, %v1468_v10  ;;  %v1028_v62 = vpop.f32.mrb[45].mxu1 }
 0x5b6   :  { %v1029_v63 = vadd.f32 %v1468_v10, %v1028_v62  ;;  %v1810_v0 = vpop.f32.mrb[46].mxu1  ;;  %1900 = vmatpush3.bf16.msra.mxu0 %v1899_v56 }
 0x5b7   :  { %v1040_v1 = vadd.f32 %v1810_v0, %v1468_v10  ;;  %v1031_v2 = vpop.f32.mrb[47].mxu1  ;;  %1901 = vmatprep.subr.bf16.mxu0 %v1973_v8  ;;  %v1057_v4 = vmax.f32 %v1037_v61, 0.0 }
 0x5b8   :  { %v1032_v3 = vadd.f32 %v1468_v10, %v1031_v2  ;;  %v1055_v6 = vmax.f32 %v1029_v63, 0.0  ;;  %v1965_v10 = vld [vmem:[%s2368_s11 + $0x20] sm:$0xff]  }
 0x5b9   :  { %v1058_v5 = vmax.f32 %v1040_v1, 0.0 }
 0x5ba   :  { %v1056_v7 = vmax.f32 %v1032_v3, 0.0  ;;  %1903 = vmatpush3.bf16.msra.mxu0 %v1902_v59 }
 0x5bb   :  { %v1908_v47 = vpack.c.bf16 %v1058_v5, %v1057_v4  ;;  %1904 = vmatprep.subr.bf16.mxu0 %v1973_v8 }
 0x5bc   :  { %v1905_v48 = vpack.c.bf16 %v1056_v7, %v1055_v6 }
 0x5be   :  { %1906 = vmatpush3.bf16.msra.mxu0 %v1905_v48 }
 0x5bf   :  { %1907 = vmatprep.subr.bf16.mxu0 %v1973_v8  ;;  %v1962_v8 = vld [vmem:[%s2368_s11 + $0x8] sm:$0xff]  }
 0x5c2   :  { %1909 = vmatpush3.bf16.msra.mxu0 %v1908_v47 }
 0x5c3   :  { %1866 = vmatprep.subr.bf16.mxu0 %v1975_v9 }
 0x5c5   :  { %1844 = vmatmul.mubr.f32.vlgmr.msra.gmra.mrb[48].mxu0 %v1091_v49 }
 0x5c6   :  { %1882 = vmatprep.mubr.msk.bf16.mxu0 %vm1974_vm0, %v1975_v9  ;;  %1867 = vmatpush3.bf16.msra.mxu0 %v1961_v51 }
 0x5c7   :  { %1868 = vmatprep.subr.bf16.mxu0 %v1975_v9 }
 0x5ca   :  { %1869 = vmatpush3.bf16.msra.mxu0 %v1962_v8 }
 0x5cb   :  { %1870 = vmatprep.subr.bf16.mxu0 %v1975_v9 }
 0x5ce   :  { %1871 = vmatpush3.bf16.msra.mxu0 %v1963_v52 }
 0x5cf   :  { %1872 = vmatprep.subr.bf16.mxu0 %v1975_v9 }
 0x5d2   :  { %1873 = vmatpush3.bf16.msra.mxu0 %v1964_v53 }
 0x5d3   :  { %1874 = vmatprep.subr.bf16.mxu0 %v1975_v9 }
 0x5d6   :  { %1875 = vmatpush3.bf16.msra.mxu0 %v1965_v10 }
 0x5d7   :  { %1876 = vmatprep.subr.bf16.mxu0 %v1975_v9 }
 0x5da   :  { %1877 = vmatpush3.bf16.msra.mxu0 %v1966_v11 }
 0x5db   :  { %1878 = vmatprep.subr.bf16.mxu0 %v1975_v9 }
 0x5de   :  { %1879 = vmatpush3.bf16.msra.mxu0 %v1967_v15 }
 0x5df   :  { %1880 = vmatprep.subr.bf16.mxu0 %v1975_v9  ;;  %v1478_v9 = vld [vmem:[%s2370_s12] ss:$0 sm:$0xff] }
 0x5e2   :  { %1881 = vmatpush3.bf16.msra.mxu0 %v1968_v17 }
 0x698   :  { %v1173_v12 = vpop.f32.mrb[48].mxu0 }
 0x699   :  { %v1177_v13 = vpack.c.bf16 %v1173_v12, %v1173_v12  ;;  %v1845_v14 = vpop.f32.mrb[49].mxu0 }
 0x69b   :  { %1863 = vmatmul.mubr.bf16.vlgmr.msra.gmra.mrb[48].mxu1 %v1177_v13 }
 0x76e   :  { %v1283_v19 = vpop.f32.mrb[48].mxu1 }
 0x76f   :  { %v1284_v20 = vadd.f32 %v1469_v18, %v1283_v19  ;;  %v1864_v21 = vpop.f32.mrb[49].mxu1 }
 0x770   :  { %v1286_v22 = vpop.f32.mrb[50].mxu1 }
 0x771   :  { %v1289_v23 = vmax.f32 %v1284_v20, 0.0  ;;  %v1865_v24 = vpop.f32.mrb[51].mxu1 }
 0x773   :  { %v1290_v25 = vpack.c.bf16 %v1289_v23, %v1289_v23 }
 0x775   :  { %1883 = vmatmul.mubr.bf16.vlgmr.msra.gmra.mrb[52].mxu0 %v1290_v25 }
 0x848   :  { %v1396_v27 = vpop.f32.mrb[52].mxu0 }
 0x849   :  { %v1397_v26 = vadd.f32 %v1478_v9, %v1396_v27  ;;  %v1884_v29 = vpop.f32.mrb[53].mxu0 }
 0x84a   :  { %v1399_v16 = vpop.f32.mrb[54].mxu0 }
 0x84b   :  { %v1409_v30 = vadd.f32 %v1487_v28, %v1397_v26  ;;  %v1885_v31 = vpop.f32.mrb[55].mxu0 }
 0x84d   :  { %1410 = vmax.xlane.f32.xlu1 %v1409_v30 }
 0x8da   :  { %v1411_v32 = vpop.xlane.xlu1 %1410 }
 0x8db   :  { %v1412_v33 = vsub.f32 %v1409_v30, %v1411_v32 }
 0x8dd   :  { %v1413_v34 = vmul.f32 1.442695, %v1412_v33 }
 0x8df   :  { %1969 = vpow2.f32 %v1413_v34 }
 0x8e9   :  { %v1970_v35 = vpop.eup %1969 }
 0x8ea   :  { %1415 = vadd.xlane.f32.xlu1 %v1970_v35 }
 0x977   :  { %v1416_v36 = vpop.xlane.xlu1 %1415 }
 0x978   :  { %1971 = vlog2.f32 %v1416_v36 }
 0x982   :  { %v1972_v37 = vpop.eup %1971 }
 0x983   :  { %v1418_v38 = vmul.f32 0.6931472, %v1972_v37 }
 0x985   :  { %v1419_v39 = vadd.f32 %v1418_v38, %v1411_v32 }
 0x987   :  { %v1420_v40 = vsub.f32 %v1409_v30, %v1419_v39 }
 0x989   :  { %1421 = vst [vmem:[%s2372_s14] sm:$0xff] %v1420_v40 }

</bundles_post_ra>
